<compile_context>
chip_gen: v7x
topology: tpu7x:2x2x1
jax: 0.10.0
libtpu: 0.0.40
codegen_flags: <defaults>
</compile_context>

<pallas_src>
import functools

import jax
import jax.numpy as jnp
from jax.experimental import pallas as pl
from jax.experimental.pallas import tpu as pltpu

EPS = 1e-40    # matches the PyTorch module (f32 subnormal; flushed to 0 by the TPU VPU)
_NEG = -1e30   # finite "-inf" for class-axis padding: exp(_NEG - m) underflows to exactly 0


def _ensemble_kernel(x_ref, eb_ref, ew_ref, o_ref, *, class_axis, approx):
    # Layouts (per batch tile):
    #   class_axis == -1 : x_ref (H, TB, Cp),  eb_ref (1, Cp),  o_ref (TB, Cp)
    #   class_axis == -2 : x_ref (H, Cp8, TB), eb_ref (Cp8, 1), o_ref (Cp8, TB)
    # ew_ref: (H,) exp(weight) in SMEM (scalar reads).
    num_heads = x_ref.shape[0]

    acc = jnp.zeros(o_ref.shape, dtype=jnp.float32)
    for h in range(num_heads):                         # H is tiny -> static unroll
        xh = x_ref[h].astype(jnp.float32)
        m = jnp.max(xh, axis=class_axis, keepdims=True)
        e = jnp.exp(xh - m)                            # class pads -> exactly 0
        s = jnp.sum(e, axis=class_axis, keepdims=True)
        # Fused softmax normalization * head weight: one approx (EUP) reciprocal
        # per row instead of a divide per element.
        scale = ew_ref[h] * pl.reciprocal(s, approx=approx)
        acc = acc + e * scale

    y = acc + eb_ref[...].astype(jnp.float32)          # class pads stay 0
    # Final normalization: exact reciprocal (one per row, negligible cost).
    inv = pl.reciprocal(jnp.sum(y, axis=class_axis, keepdims=True), approx=False)
    o_ref[...] = jnp.log(y * inv + EPS).astype(o_ref.dtype)


def _round_up(v, m):
    return -(-v // m) * m


def _pick_block_b(batch, row_bytes, align, target_bytes=4 * 1024 * 1024):
    """Batch-tile size: ~4 MiB of x per grid step, aligned; >=2 steps when possible."""
    bb = max(align, (target_bytes // max(row_bytes, 1)) // align * align)
    if bb >= batch:
        if batch >= 2 * align:
            # Split into two steps so v7x's two TensorCores both get work.
            bb = _round_up(-(-batch // 2), align)
        else:
            bb = batch      # single full-extent block (always a legal block shape)
    return bb


@functools.partial(
    jax.jit,
    static_argnames=("block_b", "x_feed_dtype", "approx_reciprocal", "interpret"))
def arithmetic_weighted_ensemble(x, weight, bias, *, block_b=None,
                                 x_feed_dtype=jnp.bfloat16,
                                 approx_reciprocal=True, interpret=False):
    """x: (B, H, C), weight: (1, H, 1), bias: (1, C)  ->  (B, C) float32.

    `x_feed_dtype=jnp.bfloat16` (default) halves HBM read traffic by quantizing
    the logits before the kernel (math stays f32 inside); pass jnp.float32 for
    bit-closer parity with the f32 PyTorch module.
    """
    B, H, C = x.shape
    assert weight.shape == (1, H, 1) and bias.shape == (1, C)

    feed_dtype = jnp.dtype(x_feed_dtype)
    itemsize = feed_dtype.itemsize

    class_on_lanes = C >= 128
    if class_on_lanes:
        # Lane-major: (H, B, Cp) with the class axis dense on the 128 lanes.
        c_pad = _round_up(C, 128)
        xt = jnp.transpose(x, (1, 0, 2)).astype(feed_dtype)   # cast fused into copy
        if c_pad != C:
            xt = jnp.pad(xt, ((0, 0), (0, 0), (0, c_pad - C)), constant_values=_NEG)
        exp_b = jnp.exp(bias.astype(jnp.float32)).reshape(1, C)
        if c_pad != C:
            exp_b = jnp.pad(exp_b, ((0, 0), (0, c_pad - C)))  # zeros on pad lanes
        class_axis = -1
    else:
        # Small C: classes on sublanes (pad to 8), batch on the 128-lane axis.
        # Avoids the 8x traffic blowup of padding C=16 to 128 lanes.
        c_pad = _round_up(C, 8)
        xt = jnp.transpose(x, (1, 2, 0)).astype(feed_dtype)   # (H, C, B)
        if c_pad != C:
            xt = jnp.pad(xt, ((0, 0), (0, c_pad - C), (0, 0)), constant_values=_NEG)
        exp_b = jnp.exp(bias.astype(jnp.float32)).reshape(C, 1)
        if c_pad != C:
            exp_b = jnp.pad(exp_b, ((0, c_pad - C), (0, 0)))
        class_axis = -2

    exp_w = jnp.exp(weight.astype(jnp.float32)).reshape(H)    # (H,) -> SMEM

    # Batch tile: byte-based sizing, no batch padding (ragged last grid block).
    align = 8 if class_on_lanes else 128
    if block_b is None:
        block_b = _pick_block_b(B, H * c_pad * itemsize, align)
    block_b = int(min(block_b, B))
    if block_b < B:                       # blocks smaller than B must be aligned
        block_b = _round_up(block_b, align)
        if block_b > B:
            block_b = B
    grid_b = -(-B // block_b)

    if class_on_lanes:
        x_spec = pl.BlockSpec((H, block_b, c_pad), lambda i: (0, i, 0))
        b_spec = pl.BlockSpec((1, c_pad), lambda i: (0, 0))
        o_spec = pl.BlockSpec((block_b, c_pad), lambda i: (i, 0))
        out_shape = jax.ShapeDtypeStruct((B, c_pad), jnp.float32)
        out_elems = B * c_pad
    else:
        x_spec = pl.BlockSpec((H, c_pad, block_b), lambda i: (0, 0, i))
        b_spec = pl.BlockSpec((c_pad, 1), lambda i: (0, 0))
        o_spec = pl.BlockSpec((c_pad, block_b), lambda i: (0, i))
        out_shape = jax.ShapeDtypeStruct((c_pad, B), jnp.float32)
        out_elems = c_pad * B

    cost = pl.CostEstimate(
        flops=int((4 * H + 3) * B * C),
        transcendentals=int((H + 1) * B * C),
        bytes_accessed=int(H * c_pad * B * itemsize + c_pad * 4
                           + out_elems * 4 + H * 4),
    )

    kernel = functools.partial(_ensemble_kernel, class_axis=class_axis,
                               approx=approx_reciprocal)

    out = pl.pallas_call(
        kernel,
        out_shape=out_shape,
        grid=(grid_b,),
        in_specs=[
            x_spec,
            b_spec,
            pl.BlockSpec(memory_space=pltpu.MemorySpace.SMEM),
        ],
        out_specs=o_spec,
        compiler_params=pltpu.CompilerParams(
            dimension_semantics=("parallel",),     # shard batch steps on v7x dual-TC
            # ~12-16 MiB resident (double-buffered x + f32 out): fits v7x's 64 MiB
            # physical VMEM with headroom, and raises v5e's 16 MiB scoped default.
            vmem_limit_bytes=32 * 1024 * 1024,
        ),
        cost_estimate=cost,
        interpret=interpret,
    )(xt, exp_b, exp_w)

    if class_on_lanes:
        return out[:, :C]
    return out[:C, :].T


def _reference(x, weight, bias):
    lsm = jax.nn.log_softmax(x.astype(jnp.float32), axis=-1)
    p = jnp.exp(lsm)
    y = jnp.sum(p * jnp.exp(weight), axis=1) + jnp.exp(bias)
    y = y / jnp.sum(y, axis=1, keepdims=True)
    return jnp.log(y + EPS)


if __name__ == "__main__":
    key = jax.random.PRNGKey(0)
    kx1, kx2, kx3, kw, kw3 = jax.random.split(key, 5)

    # Module-shaped parameters: weight ~ N(0, 0.01) (1, H, 1); bias = zeros (1, C).
    num_heads, num_classes, batch = 4, 16, 2
    weight = 0.01 * jax.random.normal(kw, (1, num_heads, 1), dtype=jnp.float32)
    bias = jnp.zeros((1, num_classes), dtype=jnp.float32)

    # Case 1: the module's toy shapes (C=16 -> sublane-major layout), f32 feed
    # for tight parity with the PyTorch module.
    x1 = jax.random.normal(kx1, (batch, num_heads, num_classes), dtype=jnp.float32)
    o1 = jax.block_until_ready(
        arithmetic_weighted_ensemble(x1, weight, bias, x_feed_dtype=jnp.float32))
    r1 = _reference(x1, weight, bias)
    assert o1.shape == (batch, num_classes)
    assert jnp.allclose(o1, r1, atol=5e-3, rtol=5e-3)

    # Case 2: more batch rows + the default bf16 feed (halved HBM read traffic).
    x2 = jax.random.normal(kx2, (20, num_heads, num_classes), dtype=jnp.float32)
    o2 = jax.block_until_ready(arithmetic_weighted_ensemble(x2, weight, bias))
    r2 = _reference(x2, weight, bias)
    assert o2.shape == (20, num_classes)
    assert jnp.allclose(o2, r2, atol=2e-2, rtol=2e-2)

    # Case 3: wide class axis (lane-major layout, C padded 160 -> 256) with a
    # two-step ragged batch grid; f32 feed for tight parity.
    h3, c3, b3 = 3, 160, 24
    w3 = 0.01 * jax.random.normal(kw3, (1, h3, 1), dtype=jnp.float32)
    bias3 = jnp.zeros((1, c3), dtype=jnp.float32)
    x3 = jax.random.normal(kx3, (b3, h3, c3), dtype=jnp.float32)
    o3 = jax.block_until_ready(
        arithmetic_weighted_ensemble(x3, w3, bias3, x_feed_dtype=jnp.float32))
    r3 = _reference(x3, w3, bias3)
    assert o3.shape == (b3, c3)
    assert jnp.allclose(o3, r3, atol=5e-3, rtol=5e-3)

    print("KERNEL_OK")
</pallas_src>

<mosaic_0001>
module attributes {stable_mosaic.version = 11 : i64} {
  func.func @_ensemble_kernel(%arg0: i32, %arg1: memref<4x16x2xf32, #tpu.memory_space<vmem>>, %arg2: memref<16x1xf32, #tpu.memory_space<vmem>>, %arg3: memref<4xf32, #tpu.memory_space<smem>>, %arg4: memref<16x2xf32, #tpu.memory_space<vmem>>) attributes {dimension_semantics = [#tpu.dimension_semantics<parallel>], iteration_bounds = array<i64: 1>, scalar_prefetch = 0 : i64, scratch_operands = 0 : i64, tpu.core_type = #tpu.core_type<tc>, window_params = [{transform_indices = @transform_0, window_bounds = array<i64: 4, 16, 2>}, {pipeline_mode = #tpu.pipeline_mode<synchronous>, transform_indices = @transform_1, window_bounds = array<i64: 16, 1>}, {transform_indices = @transform_2, window_bounds = array<i64: 4>}, {transform_indices = @transform_3, window_bounds = array<i64: 16, 2>}]} {
    %cst = arith.constant 0.000000e+00 : f32
    %0 = vector.broadcast %cst : f32 to vector<16x2xf32>
    %c0 = arith.constant 0 : index
    %c0_0 = arith.constant 0 : index
    %c0_1 = arith.constant 0 : index
    %1 = vector.load %arg1[%c0, %c0_0, %c0_1] : memref<4x16x2xf32, #tpu.memory_space<vmem>>, vector<1x16x2xf32>
    %2 = vector.shape_cast %1 : vector<1x16x2xf32> to vector<16x2xf32>
    %cst_2 = arith.constant dense<0xFF800000> : vector<2xf32>
    %3 = vector.multi_reduction <maximumf>, %2, %cst_2 [0] : vector<16x2xf32> to vector<2xf32>
    %4 = vector.shape_cast %3 : vector<2xf32> to vector<1x2xf32>
    %5 = vector.broadcast %4 : vector<1x2xf32> to vector<16x2xf32>
    %6 = arith.subf %2, %5 : vector<16x2xf32>
    %7 = math.exp %6 : vector<16x2xf32>
    %cst_3 = arith.constant dense<0.000000e+00> : vector<2xf32>
    %8 = vector.multi_reduction <add>, %7, %cst_3 [0] : vector<16x2xf32> to vector<2xf32>
    %9 = vector.shape_cast %8 : vector<2xf32> to vector<1x2xf32>
    %c0_4 = arith.constant 0 : index
    %10 = memref.load %arg3[%c0_4] : memref<4xf32, #tpu.memory_space<smem>>
    %11 = tpu.reciprocal %9 {approx = true} : vector<1x2xf32> -> vector<1x2xf32>
    %12 = vector.broadcast %10 : f32 to vector<1x2xf32>
    %13 = arith.mulf %12, %11 : vector<1x2xf32>
    %14 = vector.broadcast %13 : vector<1x2xf32> to vector<16x2xf32>
    %15 = arith.mulf %7, %14 : vector<16x2xf32>
    %16 = arith.addf %0, %15 : vector<16x2xf32>
    %c1 = arith.constant 1 : index
    %c0_5 = arith.constant 0 : index
    %c0_6 = arith.constant 0 : index
    %17 = vector.load %arg1[%c1, %c0_5, %c0_6] : memref<4x16x2xf32, #tpu.memory_space<vmem>>, vector<1x16x2xf32>
    %18 = vector.shape_cast %17 : vector<1x16x2xf32> to vector<16x2xf32>
    %cst_7 = arith.constant dense<0xFF800000> : vector<2xf32>
    %19 = vector.multi_reduction <maximumf>, %18, %cst_7 [0] : vector<16x2xf32> to vector<2xf32>
    %20 = vector.shape_cast %19 : vector<2xf32> to vector<1x2xf32>
    %21 = vector.broadcast %20 : vector<1x2xf32> to vector<16x2xf32>
    %22 = arith.subf %18, %21 : vector<16x2xf32>
    %23 = math.exp %22 : vector<16x2xf32>
    %cst_8 = arith.constant dense<0.000000e+00> : vector<2xf32>
    %24 = vector.multi_reduction <add>, %23, %cst_8 [0] : vector<16x2xf32> to vector<2xf32>
    %25 = vector.shape_cast %24 : vector<2xf32> to vector<1x2xf32>
    %c1_9 = arith.constant 1 : index
    %26 = memref.load %arg3[%c1_9] : memref<4xf32, #tpu.memory_space<smem>>
    %27 = tpu.reciprocal %25 {approx = true} : vector<1x2xf32> -> vector<1x2xf32>
    %28 = vector.broadcast %26 : f32 to vector<1x2xf32>
    %29 = arith.mulf %28, %27 : vector<1x2xf32>
    %30 = vector.broadcast %29 : vector<1x2xf32> to vector<16x2xf32>
    %31 = arith.mulf %23, %30 : vector<16x2xf32>
    %32 = arith.addf %16, %31 : vector<16x2xf32>
    %c2 = arith.constant 2 : index
    %c0_10 = arith.constant 0 : index
    %c0_11 = arith.constant 0 : index
    %33 = vector.load %arg1[%c2, %c0_10, %c0_11] : memref<4x16x2xf32, #tpu.memory_space<vmem>>, vector<1x16x2xf32>
    %34 = vector.shape_cast %33 : vector<1x16x2xf32> to vector<16x2xf32>
    %cst_12 = arith.constant dense<0xFF800000> : vector<2xf32>
    %35 = vector.multi_reduction <maximumf>, %34, %cst_12 [0] : vector<16x2xf32> to vector<2xf32>
    %36 = vector.shape_cast %35 : vector<2xf32> to vector<1x2xf32>
    %37 = vector.broadcast %36 : vector<1x2xf32> to vector<16x2xf32>
    %38 = arith.subf %34, %37 : vector<16x2xf32>
    %39 = math.exp %38 : vector<16x2xf32>
    %cst_13 = arith.constant dense<0.000000e+00> : vector<2xf32>
    %40 = vector.multi_reduction <add>, %39, %cst_13 [0] : vector<16x2xf32> to vector<2xf32>
    %41 = vector.shape_cast %40 : vector<2xf32> to vector<1x2xf32>
    %c2_14 = arith.constant 2 : index
    %42 = memref.load %arg3[%c2_14] : memref<4xf32, #tpu.memory_space<smem>>
    %43 = tpu.reciprocal %41 {approx = true} : vector<1x2xf32> -> vector<1x2xf32>
    %44 = vector.broadcast %42 : f32 to vector<1x2xf32>
    %45 = arith.mulf %44, %43 : vector<1x2xf32>
    %46 = vector.broadcast %45 : vector<1x2xf32> to vector<16x2xf32>
    %47 = arith.mulf %39, %46 : vector<16x2xf32>
    %48 = arith.addf %32, %47 : vector<16x2xf32>
    %c3 = arith.constant 3 : index
    %c0_15 = arith.constant 0 : index
    %c0_16 = arith.constant 0 : index
    %49 = vector.load %arg1[%c3, %c0_15, %c0_16] : memref<4x16x2xf32, #tpu.memory_space<vmem>>, vector<1x16x2xf32>
    %50 = vector.shape_cast %49 : vector<1x16x2xf32> to vector<16x2xf32>
    %cst_17 = arith.constant dense<0xFF800000> : vector<2xf32>
    %51 = vector.multi_reduction <maximumf>, %50, %cst_17 [0] : vector<16x2xf32> to vector<2xf32>
    %52 = vector.shape_cast %51 : vector<2xf32> to vector<1x2xf32>
    %53 = vector.broadcast %52 : vector<1x2xf32> to vector<16x2xf32>
    %54 = arith.subf %50, %53 : vector<16x2xf32>
    %55 = math.exp %54 : vector<16x2xf32>
    %cst_18 = arith.constant dense<0.000000e+00> : vector<2xf32>
    %56 = vector.multi_reduction <add>, %55, %cst_18 [0] : vector<16x2xf32> to vector<2xf32>
    %57 = vector.shape_cast %56 : vector<2xf32> to vector<1x2xf32>
    %c3_19 = arith.constant 3 : index
    %58 = memref.load %arg3[%c3_19] : memref<4xf32, #tpu.memory_space<smem>>
    %59 = tpu.reciprocal %57 {approx = true} : vector<1x2xf32> -> vector<1x2xf32>
    %60 = vector.broadcast %58 : f32 to vector<1x2xf32>
    %61 = arith.mulf %60, %59 : vector<1x2xf32>
    %62 = vector.broadcast %61 : vector<1x2xf32> to vector<16x2xf32>
    %63 = arith.mulf %55, %62 : vector<16x2xf32>
    %64 = arith.addf %48, %63 : vector<16x2xf32>
    %c0_20 = arith.constant 0 : index
    %c0_21 = arith.constant 0 : index
    %65 = vector.load %arg2[%c0_20, %c0_21] : memref<16x1xf32, #tpu.memory_space<vmem>>, vector<16x1xf32>
    %66 = vector.broadcast %65 : vector<16x1xf32> to vector<16x2xf32>
    %67 = arith.addf %64, %66 : vector<16x2xf32>
    %cst_22 = arith.constant dense<0.000000e+00> : vector<2xf32>
    %68 = vector.multi_reduction <add>, %67, %cst_22 [0] : vector<16x2xf32> to vector<2xf32>
    %69 = vector.shape_cast %68 : vector<2xf32> to vector<1x2xf32>
    %70 = tpu.reciprocal %69 : vector<1x2xf32> -> vector<1x2xf32>
    %71 = vector.broadcast %70 : vector<1x2xf32> to vector<16x2xf32>
    %72 = arith.mulf %67, %71 : vector<16x2xf32>
    %cst_23 = arith.constant 9.999940e-41 : f32
    %73 = vector.broadcast %cst_23 : f32 to vector<16x2xf32>
    %74 = arith.addf %72, %73 : vector<16x2xf32>
    %75 = math.log %74 : vector<16x2xf32>
    %c0_24 = arith.constant 0 : index
    %c0_25 = arith.constant 0 : index
    %76 = vector.load %arg4[%c0_24, %c0_25] : memref<16x2xf32, #tpu.memory_space<vmem>>, vector<16x2xf32>
    tpu.vector_store %arg4[%c0_24, %c0_25], %75 {strides = array<i32>} : memref<16x2xf32, #tpu.memory_space<vmem>>, vector<16x2xf32>,
    return
  }
  func.func @transform_0(%arg0: i32) -> (i32, i32, i32) {
    %c0_i32 = arith.constant 0 : i32
    %c0_i32_0 = arith.constant 0 : i32
    %c0_i32_1 = arith.constant 0 : i32
    return %c0_i32, %c0_i32_0, %arg0 : i32, i32, i32
  }
  func.func @transform_1(%arg0: i32) -> (i32, i32) {
    %c0_i32 = arith.constant 0 : i32
    %c0_i32_0 = arith.constant 0 : i32
    %c0_i32_1 = arith.constant 0 : i32
    return %c0_i32, %c0_i32_0 : i32, i32
  }
  func.func @transform_2(%arg0: i32) -> i32 {
    %c0_i32 = arith.constant 0 : i32
    %c0_i32_0 = arith.constant 0 : i32
    return %c0_i32 : i32
  }
  func.func @transform_3(%arg0: i32) -> (i32, i32) {
    %c0_i32 = arith.constant 0 : i32
    %c0_i32_0 = arith.constant 0 : i32
    return %c0_i32, %arg0 : i32, i32
  }
}

</mosaic_0001>

<bundles_post_ra>
// kernel: arithmetic_weighted_ensemble.1
= control target key start
LH: loop header
LB: loop body
LE: loop exit
PB: predicated region body
PF: predicated region fallthrough
CT: control target
= control target key end

     0   :  { %8 = vsyncpa [#allocation3], 0  ;;  %s351_s0 = inlined_call_operand.vmem [shape: f32[4,16,2], index: 0, kind: input, shape index: {}]   ;;  %s352_s1 = inlined_call_operand.vmem [shape: f32[16,1], index: 1, kind: input, shape index: {}]   ;;  %s353_s2 = inlined_call_operand.vmem [shape: f32[4], index: 2, kind: input, shape index: {}]   ;;  %s354_s3 = inlined_call_operand.vmem [shape: f32[16,2], index: 3, kind: output, shape index: {}]  }
   0x1   :  { %s19_s14 = sshll.u32 %s353_s2, 4  ;;  %s20_s14 = int_to_ptr.vmem [resolvable:$true] %s19_s14 }
   0x2   :  { %s248_s15 = scalar_lea.vmem %s20_s14, 16  ;;  %p253_p1 = scmp.lt.s32.totalorder %s20_s14, %s20_s14 }
   0x3   :  { %p249_p0 = scmp.ne.s32.totalorder %s20_s14, %s248_s15  ;;  %p254_p2 = scmp.lt.s32.totalorder %s248_s15, %s248_s15 }
   0x5   :  { %p255_p3 = por %p254_p2, %p253_p1 }
   0x7   :  { %p256_p4 = pnand %p255_p3, %p249_p0 }
   0x9   :  { %259 = shalt.err (!%p256_p4)
}
   0xa   :  { %s262_s16 = smov [#allocation2]  }
   0xb   :  { %22 = dma.vmem_to_smem %s20_s14, 16, %s262_s16, [#allocation3]  }
   0xc   :  { %260 = dma.done.wait [#allocation3], 16  }
   0xd   :  { %261 = vsyncadd [#allocation3], 4294967280 }
   0xe   :  { %26 = sfence }
   0xf   :  { %v167_v0 = vld [vmem:[%s352_s1] sm:$0xff]  ;;  %v263_v1 = vmov 0   ;;  %v168_v2 = vld [vmem:[%s352_s1 + $0x8] sm:$0xff]  ;;  %vm29_vm0 = vcmask 15360   ;;  %v206_v5 = vld [vmem:[%s351_s0 + $0x10] sm:$0xff]  ;;  %s208_s8 = sld [smem:[#allocation2 + $0x1]] }
  0x10   :  { %217 = vset.pattern.permute.xlu0 %v263_v1  ;;  %v27_v3 = vld [vmem:[%s351_s0] sm:$0xff]  ;;  %v28_v4 = vld [vmem:[%s351_s0 + $0x8] sm:$0xff]  ;;  %v207_v6 = vld [vmem:[%s351_s0 + $0x18] sm:$0xff]  ;;  %v65_v9 = vsel %vm29_vm0, %v206_v5, -inf  ;;  %s211_s9 = sld [smem:[#allocation2 + $0x2]]  ;;  %s214_s10 = sld [smem:[#allocation2 + $0x3]] }
  0x11   :  { %171 = vperm.xlu0 %217, %v167_v0   ;;  %v30_v7 = vsel %vm29_vm0, %v27_v3, -inf  ;;  %v31_v8 = vsel %vm29_vm0, %v28_v4, -inf  ;;  %v66_v10 = vsel %vm29_vm0, %v207_v6, -inf  ;;  %v209_v12 = vld [vmem:[%s351_s0 + $0x20] sm:$0xff]  ;;  %v210_v13 = vld [vmem:[%s351_s0 + $0x28] sm:$0xff]  ;;  %v212_v18 = vld [vmem:[%s351_s0 + $0x30] sm:$0xff] }
  0x12   :  { %v32_v11 = vmax.f32 %v30_v7, %v31_v8  ;;  %v67_v14 = vmax.f32 %v65_v9, %v66_v10  ;;  %v100_v15 = vsel %vm29_vm0, %v209_v12, -inf  ;;  %v101_v16 = vsel %vm29_vm0, %v210_v13, -inf  ;;  %v213_v19 = vld [vmem:[%s351_s0 + $0x38] sm:$0xff]  ;;  %s54_s0 = sld [smem:[#allocation2]] }
  0x13   :  { %v102_v21 = vmax.f32 %v100_v15, %v101_v16  ;;  %v135_v22 = vsel %vm29_vm0, %v212_v18, -inf  ;;  %v136_v23 = vsel %vm29_vm0, %v213_v19, -inf }
  0x14   :  { %v33_v17 = vrot.slane %v32_v11, 4  ;;  %v68_v20 = vrot.slane %v67_v14, 4  ;;  %v137_v27 = vmax.f32 %v135_v22, %v136_v23 }
  0x15   :  { %176 = vperm.xlu0 %217, %v168_v2   ;;  %v103_v26 = vrot.slane %v102_v21, 4 }
  0x16   :  { %v34_v24 = vmax.f32 %v32_v11, %v33_v17  ;;  %v69_v25 = vmax.f32 %v67_v14, %v68_v20  ;;  %v138_v31 = vrot.slane %v137_v27, 4 }
  0x17   :  { %v104_v30 = vmax.f32 %v102_v21, %v103_v26 }
  0x18   :  { %v35_v28 = vrot.slane %v34_v24, 2  ;;  %v70_v29 = vrot.slane %v69_v25, 2  ;;  %v139_v35 = vmax.f32 %v137_v27, %v138_v31 }
  0x19   :  { %v105_v34 = vrot.slane %v104_v30, 2 }
  0x1a   :  { %v36_v32 = vmax.f32 %v34_v24, %v35_v28  ;;  %v71_v33 = vmax.f32 %v69_v25, %v70_v29  ;;  %v140_v39 = vrot.slane %v139_v35, 2 }
  0x1b   :  { %v106_v38 = vmax.f32 %v104_v30, %v105_v34 }
  0x1c   :  { %v37_v36 = vrot.slane %v36_v32, 1  ;;  %v72_v37 = vrot.slane %v71_v33, 1  ;;  %v141_v43 = vmax.f32 %v139_v35, %v140_v39 }
  0x1d   :  { %v107_v42 = vrot.slane %v106_v38, 1 }
  0x1e   :  { %v38_v40 = vmax.f32 %v36_v32, %v37_v36  ;;  %v73_v41 = vmax.f32 %v71_v33, %v72_v37  ;;  %v142_v48 = vrot.slane %v141_v43, 1 }
  0x1f   :  { %v108_v47 = vmax.f32 %v106_v38, %v107_v42 }
  0x20   :  { %v39_v44 = vsub.f32 %v27_v3, %v38_v40  ;;  %v40_v45 = vsub.f32 %v28_v4, %v38_v40  ;;  %v74_v46 = vsub.f32 %v206_v5, %v73_v41  ;;  %v75_v49 = vsub.f32 %v207_v6, %v73_v41 }
  0x21   :  { %v109_v53 = vsub.f32 %v209_v12, %v108_v47  ;;  %v143_v54 = vmax.f32 %v141_v43, %v142_v48  ;;  %v110_v56 = vsub.f32 %v210_v13, %v108_v47 }
  0x22   :  { %v41_v50 = vmul.f32 1.442695, %v39_v44  ;;  %v43_v51 = vmul.f32 1.442695, %v40_v45  ;;  %v76_v52 = vmul.f32 1.442695, %v74_v46  ;;  %v56_v45 = vstv %s54_s0 }
  0x23   :  { %v78_v55 = vmul.f32 1.442695, %v75_v49  ;;  %v111_v57 = vmul.f32 1.442695, %v109_v53  ;;  %v144_v58 = vsub.f32 %v212_v18, %v143_v54  ;;  %v113_v59 = vmul.f32 1.442695, %v110_v56 }
  0x24   :  { %218 = vpow2.f32 %v41_v50  ;;  %v145_v60 = vsub.f32 %v213_v19, %v143_v54  ;;  %v91_v46 = vstv %s208_s8  ;;  %v126_v50 = vstv %s211_s9 }
  0x25   :  { %220 = vpow2.f32 %v43_v51  ;;  %v146_v61 = vmul.f32 1.442695, %v144_v58 }
  0x26   :  { %222 = vpow2.f32 %v76_v52  ;;  %v148_v62 = vmul.f32 1.442695, %v145_v60 }
  0x27   :  { %224 = vpow2.f32 %v78_v55  ;;  %v161_v55 = vstv %s214_s10 }
  0x28   :  { %226 = vpow2.f32 %v111_v57 }
  0x29   :  { %228 = vpow2.f32 %v113_v59 }
  0x2a   :  { %230 = vpow2.f32 %v146_v61 }
  0x2b   :  { %232 = vpow2.f32 %v148_v62 }
  0x2e   :  { %v219_v63 = vpop.eup %218 }
  0x2f   :  { %v325_v0 = vpop.eup %220  ;;  %v45_v3 = vsel %vm29_vm0, %v219_v63, 0.0 }
  0x30   :  { %v223_v1 = vpop.eup %222  ;;  %v46_v4 = vsel %vm29_vm0, %v325_v0, 0.0 }
  0x31   :  { %v327_v2 = vpop.eup %224  ;;  %v80_v6 = vsel %vm29_vm0, %v223_v1, 0.0  ;;  %v47_v9 = vadd.f32 %v46_v4, %v45_v3 }
  0x32   :  { %v227_v5 = vpop.eup %226  ;;  %v81_v7 = vsel %vm29_vm0, %v327_v2, 0.0 }
  0x33   :  { %v229_v8 = vpop.eup %228  ;;  %v82_v10 = vadd.f32 %v81_v7, %v80_v6  ;;  %v115_v12 = vsel %vm29_vm0, %v227_v5, 0.0  ;;  %v48_v15 = vrot.slane %v47_v9, 4 }
  0x34   :  { %v231_v11 = vpop.eup %230  ;;  %v116_v13 = vsel %vm29_vm0, %v229_v8, 0.0 }
  0x35   :  { %v233_v14 = vpop.eup %232  ;;  %v83_v16 = vrot.slane %v82_v10, 4  ;;  %v117_v17 = vadd.f32 %v116_v13, %v115_v12  ;;  %v150_v18 = vsel %vm29_vm0, %v231_v11, 0.0  ;;  %v49_v20 = vadd.f32 %v48_v15, %v47_v9 }
  0x36   :  { %v151_v19 = vsel %vm29_vm0, %v233_v14, 0.0 }
  0x37   :  { %v84_v21 = vadd.f32 %v83_v16, %v82_v10  ;;  %v118_v22 = vrot.slane %v117_v17, 4  ;;  %v152_v23 = vadd.f32 %v151_v19, %v150_v18  ;;  %v50_v24 = vrot.slane %v49_v20, 2 }
  0x39   :  { %v85_v25 = vrot.slane %v84_v21, 2  ;;  %v119_v26 = vadd.f32 %v118_v22, %v117_v17  ;;  %v153_v27 = vrot.slane %v152_v23, 4  ;;  %v51_v28 = vadd.f32 %v50_v24, %v49_v20 }
  0x3b   :  { %v86_v29 = vadd.f32 %v85_v25, %v84_v21  ;;  %v120_v30 = vrot.slane %v119_v26, 2  ;;  %v154_v31 = vadd.f32 %v153_v27, %v152_v23  ;;  %v52_v32 = vrot.slane %v51_v28, 1 }
  0x3d   :  { %v87_v33 = vrot.slane %v86_v29, 1  ;;  %v121_v34 = vadd.f32 %v120_v30, %v119_v26  ;;  %v155_v35 = vrot.slane %v154_v31, 2  ;;  %v53_v36 = vadd.f32 %v52_v32, %v51_v28 }
  0x3f   :  { %v88_v37 = vadd.f32 %v87_v33, %v86_v29  ;;  %v122_v38 = vrot.slane %v121_v34, 1  ;;  %v156_v39 = vadd.f32 %v155_v35, %v154_v31  ;;  %234 = vrcp.f32 %v53_v36 }
  0x41   :  { %236 = vrcp.f32 %v88_v37  ;;  %v123_v40 = vadd.f32 %v122_v38, %v121_v34  ;;  %v157_v41 = vrot.slane %v156_v39, 1 }
  0x43   :  { %238 = vrcp.f32 %v123_v40  ;;  %v158_v42 = vadd.f32 %v157_v41, %v156_v39 }
  0x45   :  { %240 = vrcp.f32 %v158_v42 }
  0x49   :  { %v235_v43 = vpop.eup %234 }
  0x4a   :  { %v57_v47 = vmul.f32 %v235_v43, %v56_v45 }
  0x4b   :  { %v237_v44 = vpop.eup %236 }
  0x4c   :  { %v92_v48 = vmul.f32 %v237_v44, %v91_v46  ;;  %v58_v51 = vmul.f32 %v219_v63, %v57_v47  ;;  %v59_v56 = vmul.f32 %v325_v0, %v57_v47 }
  0x4d   :  { %v239_v49 = vpop.eup %238 }
  0x4e   :  { %v93_v52 = vmul.f32 %v223_v1, %v92_v48  ;;  %v127_v53 = vmul.f32 %v239_v49, %v126_v50  ;;  %v94_v57 = vmul.f32 %v327_v2, %v92_v48 }
  0x4f   :  { %v241_v54 = vpop.eup %240 }
  0x50   :  { %v95_v58 = vadd.f32 %v93_v52, %v58_v51  ;;  %v128_v59 = vmul.f32 %v227_v5, %v127_v53  ;;  %v162_v60 = vmul.f32 %v241_v54, %v161_v55  ;;  %v96_v61 = vadd.f32 %v94_v57, %v59_v56 }
  0x51   :  { %v129_v62 = vmul.f32 %v229_v8, %v127_v53 }
  0x52   :  { %v130_v3 = vadd.f32 %v128_v59, %v95_v58  ;;  %v163_v4 = vmul.f32 %v231_v11, %v162_v60  ;;  %v164_v7 = vmul.f32 %v233_v14, %v162_v60 }
  0x53   :  { %v131_v6 = vadd.f32 %v129_v62, %v96_v61 }
  0x54   :  { %v165_v9 = vadd.f32 %v163_v4, %v130_v3 }
  0x55   :  { %v166_v63 = vadd.f32 %v164_v7, %v131_v6 }
  0x90   :  { %v172_v10 = vpop.permute.xlu0 %171 }
  0x91   :  { %v179_v1 = vadd.f32 %v172_v10, %v165_v9 }
  0x93   :  { %v181_v15 = vsel %vm29_vm0, %v179_v1, 0.0 }
  0x94   :  { %v177_v12 = vpop.permute.xlu0 %176 }
  0x95   :  { %v180_v13 = vadd.f32 %v177_v12, %v166_v63 }
  0x97   :  { %v182_v0 = vsel %vm29_vm0, %v180_v13, 0.0 }
  0x98   :  { %v183_v2 = vadd.f32 %v182_v0, %v181_v15 }
  0x9a   :  { %v184_v16 = vrot.slane %v183_v2, 4 }
  0x9c   :  { %v185_v5 = vadd.f32 %v184_v16, %v183_v2 }
  0x9e   :  { %v186_v17 = vrot.slane %v185_v5, 2 }
  0xa0   :  { %v187_v18 = vadd.f32 %v186_v17, %v185_v5 }
  0xa2   :  { %v188_v8 = vrot.slane %v187_v18, 1 }
  0xa4   :  { %v189_v19 = vadd.f32 %v188_v8, %v187_v18 }
  0xa6   :  { %242 = vrcp.f32 %v189_v19 }
  0xb0   :  { %v243_v11 = vpop.eup %242 }
  0xb1   :  { %v191_v14 = vmul.f32 %v243_v11, %v179_v1  ;;  %v192_v20 = vmul.f32 %v243_v11, %v180_v13 }
  0xb3   :  { %244 = vlog2.f32 %v191_v14 }
  0xb4   :  { %246 = vlog2.f32 %v192_v20 }
  0xbd   :  { %v245_v21 = vpop.eup %244 }
  0xbe   :  { %v247_v22 = vpop.eup %246  ;;  %v196_v23 = vmul.f32 0.6931472, %v245_v21 }
  0xbf   :  { %v198_v24 = vmul.f32 0.6931472, %v247_v22 }
  0xc0   :  { %199 = vst.msk [vmem:[%s354_s3] sm:$0xff] %vm29_vm0, %v196_v23 }
  0xc1   :  { %200 = vst.msk [vmem:[%s354_s3 + $0x8] sm:$0xff] %vm29_vm0, %v198_v24 }
  0xc2   :  { %205 = vsyncpa [#allocation3], 1 }

</bundles_post_ra>
